<compile_context>
chip_gen: v7x
topology: tpu7x:2x2x1
jax: 0.10.0
libtpu: 0.0.40
codegen_flags: <defaults>
</compile_context>

<pallas_src>
import math

import jax
import jax.numpy as jnp
from jax.experimental import pallas as pl
from jax.experimental.pallas import tpu as pltpu

_UNROLL_K_MAX = 32  # contraction dims up to this size use the VPU FMA path


# ----------------------------------------------------------------------------
# VMEM / tiling policy
# ----------------------------------------------------------------------------
def _vmem_limit_bytes():
    """~85% of physical VMEM (headroom for Mosaic internal scratch).
    v7x (64 MiB) -> ~54 MiB, v5e/v6e (128 MiB) -> ~108 MiB."""
    cap = None
    try:
        info = pltpu.get_tpu_info()
        cap = getattr(info, "vmem_capacity_bytes", None)
    except Exception:
        cap = None
    if not cap:
        cap = 64 << 20  # conservative fallback: v7x per-TC physical VMEM
    return int(cap * 0.85)


def _pick_b_tile(batch, bytes_per_sample, budget_bytes, min_steps=8):
    """Largest batch-divisor block whose in/out blocks fit the per-buffer
    budget, preferring >= min_steps grid steps (>= 4 per v7x TensorCore) and
    an even step count for balanced megacore work.  Returns None if even a
    single sample does not fit (caller switches to the two-pass fallback)."""
    fits = [d for d in range(1, batch + 1)
            if batch % d == 0 and d * bytes_per_sample <= budget_bytes]
    if not fits:
        return None

    def best(cands):
        even = [d for d in cands if (batch // d) % 2 == 0]
        return max(even) if even else max(cands)

    deep = [d for d in fits if batch // d >= min_steps]
    if deep:
        return best(deep)
    two = [d for d in fits if batch // d >= 2]
    if two:
        return best(two)
    return max(fits)


def _pick_s_chunk(sp, c, itemsize, budget_bytes):
    """Largest lane-aligned divisor of the padded spatial extent whose (C,
    chunk) block fits the per-buffer budget (floor: 128 lanes)."""
    n128 = sp // 128
    best = 128
    for d in range(1, n128 + 1):
        if n128 % d == 0:
            chunk = d * 128
            if c * chunk * itemsize <= budget_bytes:
                best = chunk
    return best


# ----------------------------------------------------------------------------
# Kernels
# ----------------------------------------------------------------------------
def _small_matvec(v, w, t):
    """(Bt, K) @ (K, N) + (1, N) in f32.  Small K -> unrolled VPU FMAs
    (avoids a >99%-padded MXU dot + pooled relayout); large K -> MXU dot."""
    k_dim, _ = w.shape
    if k_dim <= _UNROLL_K_MAX:
        out = t + v[:, 0:1] * w[0:1, :]
        for k in range(1, k_dim):
            out = out + v[:, k:k + 1] * w[k:k + 1, :]
        return out
    return jnp.dot(v, w, preferred_element_type=jnp.float32) + t


def se_fused_kernel(x_ref, w1_ref, t1_ref, w2_ref, t2_ref, out_ref):
    # x block: (B_tile, C, Sp); params are tiny full-array blocks.
    x = x_ref[...]                                           # native dtype

    # Squeeze: spatial sum in f32 (the avg-pool's 1/S is folded into w1).
    pooled = jnp.sum(x, axis=-1, dtype=jnp.float32)          # (Bt, C)

    # Excite (tiny, batched over B_tile): Linear+BN1 -> ELU -> Linear+BN2 -> sigmoid.
    z1 = _small_matvec(pooled, w1_ref[...], t1_ref[...])                 # (Bt, Cr)
    h1 = jnp.where(z1 > 0, z1, jnp.exp(jnp.minimum(z1, 0.0)) - 1.0)      # ELU(alpha=1)
    z2 = _small_matvec(h1, w2_ref[...], t2_ref[...])                     # (Bt, C)
    y = jax.nn.sigmoid(z2)                                               # (Bt, C) f32

    # Scale: gate multiply in f32, cast once on the way out.
    out_ref[...] = (x * y[:, :, None]).astype(out_ref.dtype)


def _pool_kernel(x_ref, sum_ref):
    # Accumulate the spatial sum across the S-chunk grid axis (axis 1).
    @pl.when(pl.program_id(1) == 0)
    def _():
        sum_ref[...] = jnp.zeros_like(sum_ref)
    sum_ref[...] += jnp.sum(x_ref[...], axis=-1, keepdims=True,
                            dtype=jnp.float32)               # (1, C, 1)


def _scale_kernel(x_ref, y_ref, out_ref):
    out_ref[...] = (x_ref[...] * y_ref[...]).astype(out_ref.dtype)


# ----------------------------------------------------------------------------
# Wrappers
# ----------------------------------------------------------------------------
def _se_fused(x_flat, w1s, t1, w2f, t2, b_tile, vmem_limit):
    B, C, Sp = x_flat.shape
    Cr = w1s.shape[1]
    itemsize = jnp.dtype(x_flat.dtype).itemsize
    param_bytes = 4 * (w1s.size + t1.size + w2f.size + t2.size)

    cost = pl.CostEstimate(
        flops=2 * B * C * Sp + 4 * B * C * Cr,
        transcendentals=B * (C + Cr),
        bytes_accessed=2 * B * C * Sp * itemsize + param_bytes,
    )
    return pl.pallas_call(
        se_fused_kernel,
        out_shape=jax.ShapeDtypeStruct((B, C, Sp), x_flat.dtype),
        grid_spec=pltpu.PrefetchScalarGridSpec(
            num_scalar_prefetch=0,
            grid=(B // b_tile,),
            in_specs=[
                pl.BlockSpec((b_tile, C, Sp), lambda b: (b, 0, 0)),
                pl.BlockSpec((C, Cr), lambda b: (0, 0)),
                pl.BlockSpec((1, Cr), lambda b: (0, 0)),
                pl.BlockSpec((Cr, C), lambda b: (0, 0)),
                pl.BlockSpec((1, C), lambda b: (0, 0)),
            ],
            out_specs=pl.BlockSpec((b_tile, C, Sp), lambda b: (b, 0, 0)),
        ),
        compiler_params=pltpu.CompilerParams(
            dimension_semantics=("parallel",),
            vmem_limit_bytes=vmem_limit,
        ),
        cost_estimate=cost,
    )(x_flat, w1s, t1, w2f, t2)


def _se_two_pass(x_flat, w1s, t1, w2f, t2, budget, vmem_limit):
    """Fallback when one sample's (C, Sp) slab does not fit the per-buffer
    budget: pool over S chunks, compute the gate, then scale over S chunks."""
    B, C, Sp = x_flat.shape
    itemsize = jnp.dtype(x_flat.dtype).itemsize
    s_chunk = _pick_s_chunk(Sp, C, itemsize, budget)
    ns = Sp // s_chunk

    pooled = pl.pallas_call(
        _pool_kernel,
        out_shape=jax.ShapeDtypeStruct((B, C, 1), jnp.float32),
        grid_spec=pltpu.PrefetchScalarGridSpec(
            num_scalar_prefetch=0,
            grid=(B, ns),
            in_specs=[pl.BlockSpec((1, C, s_chunk), lambda b, s: (b, 0, s))],
            out_specs=pl.BlockSpec((1, C, 1), lambda b, s: (b, 0, 0)),
        ),
        compiler_params=pltpu.CompilerParams(
            dimension_semantics=("parallel", "arbitrary"),
            vmem_limit_bytes=vmem_limit,
        ),
    )(x_flat)

    # Tiny excitation MLP on the pooled (B, C) vectors; O(B*C*Cr) flops, done
    # in plain JAX between the two bandwidth-bound Pallas passes.
    p = pooled[:, :, 0]                                      # (B, C) f32
    z1 = p @ w1s + t1
    h1 = jnp.where(z1 > 0, z1, jnp.expm1(jnp.minimum(z1, 0.0)))
    z2 = h1 @ w2f + t2
    y = jax.nn.sigmoid(z2)[:, :, None].astype(jnp.float32)   # (B, C, 1)

    return pl.pallas_call(
        _scale_kernel,
        out_shape=jax.ShapeDtypeStruct((B, C, Sp), x_flat.dtype),
        grid_spec=pltpu.PrefetchScalarGridSpec(
            num_scalar_prefetch=0,
            grid=(B, ns),
            in_specs=[pl.BlockSpec((1, C, s_chunk), lambda b, s: (b, 0, s)),
                      pl.BlockSpec((1, C, 1), lambda b, s: (b, 0, 0))],
            out_specs=pl.BlockSpec((1, C, s_chunk), lambda b, s: (b, 0, s)),
        ),
        compiler_params=pltpu.CompilerParams(
            dimension_semantics=("parallel", "parallel"),
            vmem_limit_bytes=vmem_limit,
        ),
    )(x_flat, y)


def se_layer(x, w1f, t1, w2f, t2, *, force_two_pass=False):
    B, C, D, H, W = x.shape
    S = D * H * W
    Sp = ((S + 127) // 128) * 128          # lane-dense spatial axis
    x_flat = x.reshape(B, C, S)
    if Sp != S:
        # Zero padding keeps the (1/S-folded) pooled sum exact; padded output
        # columns are sliced off below.
        x_flat = jnp.pad(x_flat, ((0, 0), (0, 0), (0, Sp - S)))
    itemsize = jnp.dtype(x.dtype).itemsize

    # Fold the average pool's 1/S (real S) into the BN-folded first weight.
    w1s = w1f.astype(jnp.float32) * (1.0 / S)
    t1 = t1.astype(jnp.float32)
    w2f = w2f.astype(jnp.float32)
    t2 = t2.astype(jnp.float32)

    vmem_limit = _vmem_limit_bytes()
    param_bytes = 4 * (w1s.size + t1.size + w2f.size + t2.size)
    # Per-block budget: 2x in + 2x out double-buffered blocks + params +
    # ~2 MiB headroom must fit the generation-aware limit.
    budget = max((vmem_limit - param_bytes - (2 << 20)) // 4, 1 << 20)

    b_tile = _pick_b_tile(B, C * Sp * itemsize, budget)
    if force_two_pass or b_tile is None:
        out_flat = _se_two_pass(x_flat, w1s, t1, w2f, t2, budget, vmem_limit)
    else:
        out_flat = _se_fused(x_flat, w1s, t1, w2f, t2, b_tile, vmem_limit)

    if Sp != S:
        out_flat = out_flat[:, :, :S]
    return out_flat.reshape(B, C, D, H, W)


# ----------------------------------------------------------------------------
# Parameters / reference
# ----------------------------------------------------------------------------
def make_params(key, channel, reduction=4, eps=1e-5):
    """Synthetic params matching the PyTorch module, with Linear bias +
    eval-mode BatchNorm folded into (weight, shift) pairs."""
    cr = channel // reduction
    ks = jax.random.split(key, 12)

    bound1 = 1.0 / math.sqrt(channel)
    w1 = jax.random.uniform(ks[0], (cr, channel), jnp.float32, -bound1, bound1)
    b1 = jax.random.uniform(ks[1], (cr,), jnp.float32, -bound1, bound1)
    bound2 = 1.0 / math.sqrt(cr)
    w2 = jax.random.uniform(ks[2], (channel, cr), jnp.float32, -bound2, bound2)
    b2 = jax.random.uniform(ks[3], (channel,), jnp.float32, -bound2, bound2)

    # BatchNorm1d affine params / running stats (eval mode).
    g1 = jax.random.uniform(ks[4], (cr,), jnp.float32, 0.5, 1.5)
    be1 = jax.random.uniform(ks[5], (cr,), jnp.float32, -0.1, 0.1)
    rm1 = jax.random.uniform(ks[6], (cr,), jnp.float32, -0.1, 0.1)
    rv1 = jax.random.uniform(ks[7], (cr,), jnp.float32, 0.5, 1.5)
    g2 = jax.random.uniform(ks[8], (channel,), jnp.float32, 0.5, 1.5)
    be2 = jax.random.uniform(ks[9], (channel,), jnp.float32, -0.1, 0.1)
    rm2 = jax.random.uniform(ks[10], (channel,), jnp.float32, -0.1, 0.1)
    rv2 = jax.random.uniform(ks[11], (channel,), jnp.float32, 0.5, 1.5)

    # BN(z) = s*z + (beta - s*rm); fold s into W and absorb the Linear bias.
    s1 = g1 / jnp.sqrt(rv1 + eps)
    t1 = s1 * (b1 - rm1) + be1
    s2 = g2 / jnp.sqrt(rv2 + eps)
    t2 = s2 * (b2 - rm2) + be2

    w1f = (w1 * s1[:, None]).T          # (C, Cr): pooled @ w1f + t1
    w2f = (w2 * s2[:, None]).T          # (Cr, C): h1 @ w2f + t2
    return w1f, t1.reshape(1, cr), w2f, t2.reshape(1, channel)


def se_layer_ref(x, w1f, t1, w2f, t2):
    """Plain-JAX reference for correctness checking."""
    B, C = x.shape[0], x.shape[1]
    mean = jnp.mean(x.reshape(B, C, -1), axis=-1)            # (B, C)
    z1 = mean @ w1f + t1                                     # (B, Cr)
    h1 = jnp.where(z1 > 0, z1, jnp.expm1(z1))                # ELU(alpha=1)
    z2 = h1 @ w2f + t2                                       # (B, C)
    y = jax.nn.sigmoid(z2)
    return x * y[:, :, None, None, None]


def _check(x, params, **kw):
    out = jax.block_until_ready(se_layer(x, *params, **kw))
    ref = se_layer_ref(x, *params)
    assert out.shape == x.shape
    err = float(jnp.max(jnp.abs(out - ref)))
    assert jnp.allclose(out, ref, atol=1e-5, rtol=1e-5), err


if __name__ == "__main__":
    C = 8                               # channel=8, reduction=4 -> hidden=2
    key = jax.random.PRNGKey(0)
    kx1, kx2, kp = jax.random.split(key, 3)
    params = make_params(kp, C, reduction=4)

    # Lane-aligned spatial extent (S = 256): fused single-pass path.
    x1 = jax.random.normal(kx1, (2, C, 4, 8, 8), dtype=jnp.float32)
    _check(x1, params)
    # Exercise the two-pass fallback path on the same input.
    _check(x1, params, force_two_pass=True)

    # Non-lane-aligned spatial extent (S = 105 -> padded to 128).
    x2 = jax.random.normal(kx2, (2, C, 3, 5, 7), dtype=jnp.float32)
    _check(x2, params)

    print("KERNEL_OK")
</pallas_src>

<mosaic_0001>
module attributes {stable_mosaic.version = 11 : i64} {
  func.func @se_fused_kernel(%arg0: i32, %arg1: memref<1x8x256xf32, #tpu.memory_space<vmem>>, %arg2: memref<8x2xf32, #tpu.memory_space<vmem>>, %arg3: memref<1x2xf32, #tpu.memory_space<vmem>>, %arg4: memref<2x8xf32, #tpu.memory_space<vmem>>, %arg5: memref<1x8xf32, #tpu.memory_space<vmem>>, %arg6: memref<1x8x256xf32, #tpu.memory_space<vmem>>) attributes {dimension_semantics = [#tpu.dimension_semantics<parallel>], iteration_bounds = array<i64: 2>, scalar_prefetch = 0 : i64, scratch_operands = 0 : i64, tpu.core_type = #tpu.core_type<tc>, window_params = [{transform_indices = @transform_0, window_bounds = array<i64: 1, 8, 256>}, {pipeline_mode = #tpu.pipeline_mode<synchronous>, transform_indices = @transform_1, window_bounds = array<i64: 8, 2>}, {pipeline_mode = #tpu.pipeline_mode<synchronous>, transform_indices = @transform_2, window_bounds = array<i64: 1, 2>}, {pipeline_mode = #tpu.pipeline_mode<synchronous>, transform_indices = @transform_3, window_bounds = array<i64: 2, 8>}, {pipeline_mode = #tpu.pipeline_mode<synchronous>, transform_indices = @transform_4, window_bounds = array<i64: 1, 8>}, {transform_indices = @transform_5, window_bounds = array<i64: 1, 8, 256>}]} {
    %c0 = arith.constant 0 : index
    %c0_0 = arith.constant 0 : index
    %c0_1 = arith.constant 0 : index
    %0 = vector.load %arg1[%c0, %c0_0, %c0_1] : memref<1x8x256xf32, #tpu.memory_space<vmem>>, vector<1x8x256xf32>
    %cst = arith.constant dense<0.000000e+00> : vector<1x8xf32>
    %1 = vector.multi_reduction <add>, %0, %cst [2] : vector<1x8x256xf32> to vector<1x8xf32>
    %c0_2 = arith.constant 0 : index
    %c0_3 = arith.constant 0 : index
    %2 = vector.load %arg2[%c0_2, %c0_3] : memref<8x2xf32, #tpu.memory_space<vmem>>, vector<8x2xf32>
    %c0_4 = arith.constant 0 : index
    %c0_5 = arith.constant 0 : index
    %3 = vector.load %arg3[%c0_4, %c0_5] : memref<1x2xf32, #tpu.memory_space<vmem>>, vector<1x2xf32>
    %4 = vector.extract_strided_slice %1 {offsets = [0, 0], sizes = [1, 1], strides = [1, 1]} : vector<1x8xf32> to vector<1x1xf32>
    %5 = vector.extract_strided_slice %2 {offsets = [0, 0], sizes = [1, 2], strides = [1, 1]} : vector<8x2xf32> to vector<1x2xf32>
    %6 = vector.broadcast %4 : vector<1x1xf32> to vector<1x2xf32>
    %7 = arith.mulf %6, %5 : vector<1x2xf32>
    %8 = arith.addf %3, %7 : vector<1x2xf32>
    %9 = vector.extract_strided_slice %1 {offsets = [0, 1], sizes = [1, 1], strides = [1, 1]} : vector<1x8xf32> to vector<1x1xf32>
    %10 = vector.extract_strided_slice %2 {offsets = [1, 0], sizes = [1, 2], strides = [1, 1]} : vector<8x2xf32> to vector<1x2xf32>
    %11 = vector.broadcast %9 : vector<1x1xf32> to vector<1x2xf32>
    %12 = arith.mulf %11, %10 : vector<1x2xf32>
    %13 = arith.addf %8, %12 : vector<1x2xf32>
    %14 = vector.extract_strided_slice %1 {offsets = [0, 2], sizes = [1, 1], strides = [1, 1]} : vector<1x8xf32> to vector<1x1xf32>
    %15 = vector.extract_strided_slice %2 {offsets = [2, 0], sizes = [1, 2], strides = [1, 1]} : vector<8x2xf32> to vector<1x2xf32>
    %16 = vector.broadcast %14 : vector<1x1xf32> to vector<1x2xf32>
    %17 = arith.mulf %16, %15 : vector<1x2xf32>
    %18 = arith.addf %13, %17 : vector<1x2xf32>
    %19 = vector.extract_strided_slice %1 {offsets = [0, 3], sizes = [1, 1], strides = [1, 1]} : vector<1x8xf32> to vector<1x1xf32>
    %20 = vector.extract_strided_slice %2 {offsets = [3, 0], sizes = [1, 2], strides = [1, 1]} : vector<8x2xf32> to vector<1x2xf32>
    %21 = vector.broadcast %19 : vector<1x1xf32> to vector<1x2xf32>
    %22 = arith.mulf %21, %20 : vector<1x2xf32>
    %23 = arith.addf %18, %22 : vector<1x2xf32>
    %24 = vector.extract_strided_slice %1 {offsets = [0, 4], sizes = [1, 1], strides = [1, 1]} : vector<1x8xf32> to vector<1x1xf32>
    %25 = vector.extract_strided_slice %2 {offsets = [4, 0], sizes = [1, 2], strides = [1, 1]} : vector<8x2xf32> to vector<1x2xf32>
    %26 = vector.broadcast %24 : vector<1x1xf32> to vector<1x2xf32>
    %27 = arith.mulf %26, %25 : vector<1x2xf32>
    %28 = arith.addf %23, %27 : vector<1x2xf32>
    %29 = vector.extract_strided_slice %1 {offsets = [0, 5], sizes = [1, 1], strides = [1, 1]} : vector<1x8xf32> to vector<1x1xf32>
    %30 = vector.extract_strided_slice %2 {offsets = [5, 0], sizes = [1, 2], strides = [1, 1]} : vector<8x2xf32> to vector<1x2xf32>
    %31 = vector.broadcast %29 : vector<1x1xf32> to vector<1x2xf32>
    %32 = arith.mulf %31, %30 : vector<1x2xf32>
    %33 = arith.addf %28, %32 : vector<1x2xf32>
    %34 = vector.extract_strided_slice %1 {offsets = [0, 6], sizes = [1, 1], strides = [1, 1]} : vector<1x8xf32> to vector<1x1xf32>
    %35 = vector.extract_strided_slice %2 {offsets = [6, 0], sizes = [1, 2], strides = [1, 1]} : vector<8x2xf32> to vector<1x2xf32>
    %36 = vector.broadcast %34 : vector<1x1xf32> to vector<1x2xf32>
    %37 = arith.mulf %36, %35 : vector<1x2xf32>
    %38 = arith.addf %33, %37 : vector<1x2xf32>
    %39 = vector.extract_strided_slice %1 {offsets = [0, 7], sizes = [1, 1], strides = [1, 1]} : vector<1x8xf32> to vector<1x1xf32>
    %40 = vector.extract_strided_slice %2 {offsets = [7, 0], sizes = [1, 2], strides = [1, 1]} : vector<8x2xf32> to vector<1x2xf32>
    %41 = vector.broadcast %39 : vector<1x1xf32> to vector<1x2xf32>
    %42 = arith.mulf %41, %40 : vector<1x2xf32>
    %43 = arith.addf %38, %42 : vector<1x2xf32>
    %cst_6 = arith.constant 0.000000e+00 : f32
    %44 = vector.broadcast %cst_6 : f32 to vector<1x2xf32>
    %45 = arith.cmpf ogt, %43, %44 : vector<1x2xf32>
    %cst_7 = arith.constant 0.000000e+00 : f32
    %46 = vector.broadcast %cst_7 : f32 to vector<1x2xf32>
    %47 = arith.minimumf %43, %46 : vector<1x2xf32>
    %48 = math.exp %47 : vector<1x2xf32>
    %cst_8 = arith.constant 1.000000e+00 : f32
    %49 = vector.broadcast %cst_8 : f32 to vector<1x2xf32>
    %50 = arith.subf %48, %49 : vector<1x2xf32>
    %51 = arith.select %45, %43, %50 : vector<1x2xi1>, vector<1x2xf32>
    %c0_9 = arith.constant 0 : index
    %c0_10 = arith.constant 0 : index
    %52 = vector.load %arg4[%c0_9, %c0_10] : memref<2x8xf32, #tpu.memory_space<vmem>>, vector<2x8xf32>
    %c0_11 = arith.constant 0 : index
    %c0_12 = arith.constant 0 : index
    %53 = vector.load %arg5[%c0_11, %c0_12] : memref<1x8xf32, #tpu.memory_space<vmem>>, vector<1x8xf32>
    %54 = vector.extract_strided_slice %51 {offsets = [0, 0], sizes = [1, 1], strides = [1, 1]} : vector<1x2xf32> to vector<1x1xf32>
    %55 = vector.extract_strided_slice %52 {offsets = [0, 0], sizes = [1, 8], strides = [1, 1]} : vector<2x8xf32> to vector<1x8xf32>
    %56 = vector.broadcast %54 : vector<1x1xf32> to vector<1x8xf32>
    %57 = arith.mulf %56, %55 : vector<1x8xf32>
    %58 = arith.addf %53, %57 : vector<1x8xf32>
    %59 = vector.extract_strided_slice %51 {offsets = [0, 1], sizes = [1, 1], strides = [1, 1]} : vector<1x2xf32> to vector<1x1xf32>
    %60 = vector.extract_strided_slice %52 {offsets = [1, 0], sizes = [1, 8], strides = [1, 1]} : vector<2x8xf32> to vector<1x8xf32>
    %61 = vector.broadcast %59 : vector<1x1xf32> to vector<1x8xf32>
    %62 = arith.mulf %61, %60 : vector<1x8xf32>
    %63 = arith.addf %58, %62 : vector<1x8xf32>
    %64 = arith.negf %63 : vector<1x8xf32>
    %65 = math.exp %64 : vector<1x8xf32>
    %cst_13 = arith.constant 1.000000e+00 : f32
    %66 = vector.broadcast %cst_13 : f32 to vector<1x8xf32>
    %67 = arith.addf %66, %65 : vector<1x8xf32>
    %68 = arith.divf %66, %67 : vector<1x8xf32>
    %69 = vector.shape_cast %68 : vector<1x8xf32> to vector<1x8x1xf32>
    %70 = vector.broadcast %69 : vector<1x8x1xf32> to vector<1x8x256xf32>
    %71 = arith.mulf %0, %70 : vector<1x8x256xf32>
    %c0_14 = arith.constant 0 : index
    %c0_15 = arith.constant 0 : index
    %c0_16 = arith.constant 0 : index
    %72 = vector.load %arg6[%c0_14, %c0_15, %c0_16] : memref<1x8x256xf32, #tpu.memory_space<vmem>>, vector<1x8x256xf32>
    tpu.vector_store %arg6[%c0_14, %c0_15, %c0_16], %71 {strides = array<i32>} : memref<1x8x256xf32, #tpu.memory_space<vmem>>, vector<1x8x256xf32>,
    return
  }
  func.func @transform_0(%arg0: i32) -> (i32, i32, i32) {
    %c0_i32 = arith.constant 0 : i32
    %c0_i32_0 = arith.constant 0 : i32
    %c0_i32_1 = arith.constant 0 : i32
    return %arg0, %c0_i32, %c0_i32_0 : i32, i32, i32
  }
  func.func @transform_1(%arg0: i32) -> (i32, i32) {
    %c0_i32 = arith.constant 0 : i32
    %c0_i32_0 = arith.constant 0 : i32
    %c0_i32_1 = arith.constant 0 : i32
    return %c0_i32, %c0_i32_0 : i32, i32
  }
  func.func @transform_2(%arg0: i32) -> (i32, i32) {
    %c0_i32 = arith.constant 0 : i32
    %c0_i32_0 = arith.constant 0 : i32
    %c0_i32_1 = arith.constant 0 : i32
    return %c0_i32, %c0_i32_0 : i32, i32
  }
  func.func @transform_3(%arg0: i32) -> (i32, i32) {
    %c0_i32 = arith.constant 0 : i32
    %c0_i32_0 = arith.constant 0 : i32
    %c0_i32_1 = arith.constant 0 : i32
    return %c0_i32, %c0_i32_0 : i32, i32
  }
  func.func @transform_4(%arg0: i32) -> (i32, i32) {
    %c0_i32 = arith.constant 0 : i32
    %c0_i32_0 = arith.constant 0 : i32
    %c0_i32_1 = arith.constant 0 : i32
    return %c0_i32, %c0_i32_0 : i32, i32
  }
  func.func @transform_5(%arg0: i32) -> (i32, i32, i32) {
    %c0_i32 = arith.constant 0 : i32
    %c0_i32_0 = arith.constant 0 : i32
    %c0_i32_1 = arith.constant 0 : i32
    return %arg0, %c0_i32, %c0_i32_0 : i32, i32, i32
  }
}

</mosaic_0001>

<bundles_post_ra>
// kernel: tpu_custom_call.1
= control target key start
LH: loop header
LB: loop body
LE: loop exit
PB: predicated region body
PF: predicated region fallthrough
CT: control target
= control target key end

     0   :  { %10 = vsyncpa [#allocation3], 0  ;;  %s855_s0 = inlined_call_operand.hbm [shape: f32[2,8,256], index: 0, kind: input, shape index: {}]   ;;  %s856_s1 = inlined_call_operand.vmem [shape: f32[8,2], index: 1, kind: input, shape index: {}]   ;;  %s857_s2 = inlined_call_operand.vmem [shape: f32[1,2], index: 2, kind: input, shape index: {}]   ;;  %s858_s3 = inlined_call_operand.vmem [shape: f32[2,8], index: 3, kind: input, shape index: {}]   ;;  %s859_s4 = inlined_call_operand.vmem [shape: f32[1,8], index: 4, kind: input, shape index: {}]   ;;  %s860_s5 = inlined_call_operand.hbm [shape: f32[2,8,256], index: 5, kind: output, shape index: {}]  }
   0x1   :  { %12 = vsyncpa [#allocation3 + $0x1], 0 }
   0x2   :  { %13 = vsyncpa [#allocation4], 0 }
   0x3   :  { %15 = vsyncpa [#allocation4 + $0x1], 0  ;;  %s670_s18 = smov 0   ;;  %s672_s19 = smov 0  }
   0x4   :  { %s674_s20 = smov 0   ;;  %s676_s21 = smov 0  }
   0x5 LB: > { %s691_s22 = sadd.s32 4294967295, %s633_s21   ;;  %s462_s23 = sadd.s32 4294967294, %s633_s21   ;;  %s633_s21 = sphi %s676_s21, %s875_s21   ;;  %s629_s20 = sphi %s674_s20, %s874_s20   ;;  %s625_s19 = sphi %s672_s19, %s873_s19   ;;  %s621_s18 = sphi %s670_s18, %s872_s18  }
   0x6   : > { %s695_s24 = sadd.s32 1, %s633_s21   ;;  %s28_s25 = sadd.s32 1, %s629_s20 }
   0x7   : > { %s25_s26 = ssub.s32 %s633_s21, %s695_s24  ;;  %p35_p0 = scmp.ne.s32.totalorder %s629_s20, %s625_s19 }
   0x8   : > { %p26_p1 = scmp.eq.s32.totalorder %s25_s26, 0  ;;  %p36_p2 = scmp.eq.s32.totalorder %s633_s21, 0 }
   0x9   : > { %p41_p3 = scmp.ne.s32.totalorder %s625_s19, %s621_s18  ;;  %p42_p4 = scmp.eq.s32.totalorder %s691_s22, 0 }
   0xa   : > { %s707_s27 = scalar_select %p26_p1, %s629_s20, %s28_s25  }
   0xb   : > { %p709_p5 = por %p36_p2, %p35_p0  ;;  %p713_p6 = por %p42_p4, %p41_p3 }
   0xc   : > { %p149_p7 = scmp.eq.s32.totalorder %s691_s22, 1  ;;  %p155_p8 = scmp.eq.s32.totalorder %s462_s23, 1 }
   0xd   : > { %p492_p10 = scmp.lt.s32.totalorder %s633_s21, 2  ;;  %s187_s7 = sand.u32 1, %s629_s20  }
   0xe   : > { %p720_p11 = por %p149_p7, %p35_p0  ;;  %p724_p12 = por %p155_p8, %p41_p3 }
   0xf   : > { %s478_s8 = sshll.u32 %s633_s21, 8  ;;  %s465_s9 = sshll.u32 %s187_s7, 4 }
  0x10   : > { %s864_s30 = scalar_select %p720_p11, 1, 0 }
  0x11   : > { %s865_s6 = scalar_select %p724_p12, 1, 0 }
  0x12   : > { %s733_s12 = scalar_lea.hbm %s855_s0, %s478_s8  ;;  %s191_s13 = scalar_lea.vmem [#allocation2], %s465_s9 }
  0x13   : > { %s199_s14 = sshll.u32 %s191_s13, 4  ;;  %p737_p13 = pnand %p492_p10, %p709_p5  ;;  %s741_s14 = int_to_ptr.vmem [resolvable:$true] %s199_s14 }
  0x14   : > { %s188_s16 = scalar_lea.sflag [#allocation3], %s187_s7  ;;  %s537_s17 = scalar_lea.hbm %s733_s12, 256 }
  0x15   : > { %p538_p2 = scmp.ne.s32.totalorder %s733_s12, %s537_s17  ;;  %p539_p3 = pneg %p737_p13 }
  0x16   : > { %s542_s26 = scalar_lea.hbm %s855_s0, 512  ;;  %p543_p5 = scmp.lt.u32.totalorder %s733_s12, %s855_s0 }
  0x17   : > { %p540_p4 = pnand %p539_p3, %p538_p2  ;;  %p544_p8 = scmp.lt.u32.totalorder %s542_s26, %s537_s17 }
  0x18   : > { %p546_p9 = scmp.lt.u32.totalorder %s537_s17, %s733_s12 }
  0x19   : > { %p541_p7 = pneg %p540_p4  ;;  %p545_p10 = por %p544_p8, %p543_p5 }
  0x1b   : > { %p547_p0 = por %p546_p9, %p545_p10 }
  0x1d   : > { %p548_p1 = pnand %p547_p0, %p541_p7 }
  0x1f   : > { %551 = shalt.err (!%p548_p1)
}
  0x20   : > { %s552_s7 = scalar_lea.vmem %s741_s14, 256  ;;  %s635_s9 = smov [#allocation2]  }
  0x21   : > { %p553_p2 = scmp.ne.s32.totalorder %s741_s14, %s552_s7  ;;  %s557_s10 = sshll.u32 %s635_s9, 4  ;;  %s558_s10 = int_to_ptr.vmem [resolvable:$false] %s557_s10 }
  0x22   : > { %s559_s11 = scalar_lea.vmem %s558_s10, 512  ;;  %p560_p11 = scmp.lt.s32.totalorder %s741_s14, %s558_s10 }
  0x23   : > { %p555_p4 = pnand %p553_p2, %p539_p3  ;;  %p561_p5 = scmp.lt.s32.totalorder %s559_s11, %s552_s7 }
  0x25   : > { %p556_p12 = pneg %p555_p4  ;;  %p562_p8 = por %p561_p5, %p560_p11 }
  0x27   : > { %p563_p9 = pnand %p562_p8, %p556_p12 }
  0x29   : > { %566 = shalt.err (!%p563_p9)
}
  0x2a   : > { %487 = dma.hbm_to_vmem [thread:$0]  (!%p737_p13), %s733_s12, 256, %s741_s14, %s188_s16  }
  0x2b   : > { %p867_p0 = scmp.lt.s32.totalorder %s633_s21, 3  ;;  %p868_p1 = scmp.ge.s32.totalorder %s633_s21, 1 }
  0x2d   : > { %p205_p3 = pnand %p868_p1, %p867_p0 }
  0x2e   : > { %s775_s13 = sand.u32 (!%p205_p3), 1, %s625_s19  }
  0x2f   : > { %208 = sbr.rel (%p205_p3) target bundleno = 539 (0x21b), region = 40  ;;  %s469_s17 = sshll.u32 (!%p205_p3), %s775_s13, 4 }
  0x30   : > { %s211_s23 = scalar_lea.sflag (!%p205_p3), [#allocation3], %s775_s13  ;;  %s214_s15 = scalar_lea.vmem (!%p205_p3), [#allocation2], %s469_s17 }
  0x36   : > { %612 = dma.done.wait (%p713_p6), %s211_s23, 256  }
  0x37   : > { %614 = vsyncadd (%p713_p6), %s211_s23, 4294967040  ;;  %v785_v0 = vld [vmem:[%s214_s15] sm:$0xff]  ;;  %v787_v1 = vld [vmem:[%s214_s15 + $0x8] sm:$0xff]  ;;  %v636_v3 = vmov 1   ;;  %v637_v4 = vmov 0   ;;  %v254_v7 = vlaneseq  ;;  %s479_s7 = sshll.u32 %s691_s22, 8 }
  0x38   : > { %v243_v2 = vadd.f32 %v787_v1, %v785_v0  ;;  %529 = vset.pattern.permute.xlu0 %v636_v3  ;;  %530 = vset.pattern.permute.xlu1 %v637_v4  ;;  %v638_v5 = vmov 1966171168   ;;  %v246_v10 = vld [vmem:[%s856_s1] sm:$0xff]  ;;  %s240_s9 = scalar_lea.vmem [#allocation5], %s469_s17  ;;  %s811_s15 = scalar_lea.hbm %s860_s5, %s479_s7 }
  0x39   : > { %v252_v6 = vunpack.c.l.s4 %v638_v5  ;;  %v255_v9 = vshrl.u32 %v254_v7, 7  ;;  %v247_v16 = vld [vmem:[%s857_s2] sm:$0x1]  ;;  %s392_s10 = sshll.u32 %s240_s9, 4  ;;  %s378_s22 = scalar_lea.sflag [#allocation4], %s775_s13  ;;  %s813_s10 = int_to_ptr.vmem [resolvable:$true] %s392_s10 }
  0x3a   : > { %244 = vadd.xlane.f32.xlu0 %v243_v2  ;;  %v320_v42 = vld [vmem:[%s858_s3] sm:$0x3]  ;;  %s567_s17 = scalar_lea.vmem %s813_s10, 256  ;;  %p869_p11 = scmp.ne.s32.totalorder %s864_s30, 0 }
  0x3b   : > { %v253_v8 = vunpack.c.0.s8 %v252_v6  ;;  %v329_v41 = vsub.s32 0, %v255_v9  ;;  %v321_v50 = vld [vmem:[%s859_s4] sm:$0x1]  ;;  %p568_p6 = scmp.ne.s32.totalorder %s813_s10, %s567_s17  ;;  %s639_s12 = smov [#allocation5]  }
  0x3c   : > { %s571_s29 = sshll.u32 %s639_s12, 4  ;;  %s572_s29 = int_to_ptr.vmem [resolvable:$false] %s571_s29 }
  0x3d   : > { %v256_v11 = vsub.s32 %v253_v8, %v255_v9  ;;  %p569_p12 = pnand %p568_p6, %p869_p11  ;;  %s573_s14 = scalar_lea.vmem %s572_s29, 512 }
  0x3e   : > { %p574_p7 = scmp.lt.s32.totalorder %s813_s10, %s572_s29  ;;  %p575_p10 = scmp.lt.s32.totalorder %s573_s14, %s567_s17 }
  0x3f   : > { %p570_p13 = pneg %p569_p12 }
  0x40   : > { %p576_p2 = por %p575_p10, %p574_p7 }
  0x42   : > { %p577_p4 = pnand %p576_p2, %p570_p13 }
  0xc7   : > { %v245_v12 = vpop.xlane.xlu0 %244 }
  0xc8   : > { %v248_v13 = vmul.f32 %v246_v10, %v245_v12 }
  0xca   : > { %v257_v14 = vrot.slane %v248_v13, %v256_v11  ;;  %v281_v15 = vcombine.high %v248_v13, %v248_v13  ;;  %v249_v19 = vadd.f32 %v248_v13, %v247_v16 }
  0xcc   : > { %v258_v17 = vcombine.high %v257_v14, %v257_v14  ;;  %v265_v18 = vrot.slane %v257_v14, %v256_v11  ;;  %v288_v21 = vrot.slane %v281_v15, %v256_v11 }
  0xce   : > { %v272_v20 = vrot.slane %v258_v17, %v256_v11  ;;  %v275_v23 = vcombine.high %v265_v18, %v265_v18  ;;  %v298_v26 = vcombine.high %v288_v21, %v288_v21  ;;  %v295_v28 = vrot.slane %v288_v21, %v256_v11 }
  0xd0   : > { %v274_v22 = vadd.f32 %v272_v20, %v249_v19  ;;  %v278_v25 = vcombine.high %v272_v20, %v272_v20  ;;  %v305_v30 = vrot.slane %v298_v26, %v256_v11  ;;  %v308_v32 = vcombine.high %v295_v28, %v295_v28 }
  0xd2   : > { %v277_v24 = vadd.f32 %v275_v23, %v274_v22  ;;  %v311_v34 = vcombine.high %v305_v30, %v305_v30 }
  0xd4   : > { %v280_v27 = vadd.f32 %v278_v25, %v277_v24 }
  0xd6   : > { %v297_v29 = vadd.f32 %v295_v28, %v280_v27 }
  0xd8   : > { %v307_v31 = vadd.f32 %v305_v30, %v297_v29 }
  0xda   : > { %v310_v33 = vadd.f32 %v308_v32, %v307_v31 }
  0xdc   : > { %v313_v35 = vadd.f32 %v311_v34, %v310_v33 }
  0xde   : > { %v315_v36 = vmin.f32 %v313_v35, 0.0  ;;  %vm314_vm0 = vcmp.gt.f32.partialorder %v313_v35, 0.0 }
  0xe0   : > { %v316_v37 = vmul.f32 1.442695, %v315_v36 }
  0xe2   : > { %531 = vpow2.f32 %v316_v37 }
  0xec   : > { %v532_v38 = vpop.eup %531 }
  0xed   : > { %v471_v39 = vadd.f32 -1.0, %v532_v38 }
  0xef   : > { %v319_v40 = vsel %vm314_vm0, %v313_v35, %v471_v39 }
  0xf0   : > { %324 = vperm.xlu1 %530, %v319_v40   ;;  %334 = vperm.xlu0 %529, %v319_v40  }
 0x16f   : > { %v325_v43 = vpop.permute.xlu1 %324  ;;  %v335_v44 = vpop.permute.xlu0 %334 }
 0x170   : > { %v330_v45 = vrot.slane %v325_v43, %v329_v41  ;;  %v340_v46 = vrot.slane %v335_v44, %v329_v41 }
 0x172   : > { %v341_v47 = vmul.f32 %v340_v46, %v320_v42  ;;  %v331_v48 = vmul.f32 %v330_v45, %v320_v42 }
 0x174   : > { %v349_v49 = vrot.slane %v341_v47, %v256_v11  ;;  %v332_v52 = vadd.f32 %v331_v48, %v321_v50 }
 0x176   : > { %v350_v51 = vcombine.high %v349_v49, %v349_v49 }
 0x178   : > { %v357_v53 = vrot.slane %v350_v51, %v256_v11 }
 0x17a   : > { %v359_v54 = vadd.f32 %v357_v53, %v332_v52 }
 0x17c   : > { %v472_v55 = vmul.f32 -1.442695, %v359_v54 }
 0x17e   : > { %533 = vpow2.f32 %v472_v55 }
 0x188   : > { %v534_v56 = vpop.eup %533 }
 0x189   : > { %v363_v57 = vadd.f32 1.0, %v534_v56 }
 0x18b   : > { %535 = vrcp.f32 %v363_v57 }
 0x195   : > { %v536_v58 = vpop.eup %535 }
 0x196   : > { %v369_v59 = vrot.slane %v536_v58, %v329_v41 }
 0x198   : > { %371 = vbcast.lane.b32.xlu1 %v369_v59, 256 }
 0x20a   : > { %v372_v60 = vpop.permute.xlu1 %371 }
 0x20b   : > { %v373_v61 = vmul.f32 %v372_v60, %v785_v0  ;;  %v374_v62 = vmul.f32 %v372_v60, %v787_v1 }
 0x20d   : > { %375 = vst [vmem:[%s240_s9] sm:$0xff] %v373_v61  ;;  %376 = vst [vmem:[%s240_s9 + $0x8] sm:$0xff] %v374_v62 }
 0x20e   : > { %580 = shalt.err (!%p577_p4)
}
 0x20f   : > { %s581_s13 = scalar_lea.hbm %s811_s15, 256  ;;  %s585_s26 = scalar_lea.hbm %s860_s5, 512 }
 0x210   : > { %p582_p5 = scmp.ne.s32.totalorder %s811_s15, %s581_s13  ;;  %p586_p0 = scmp.lt.u32.totalorder %s811_s15, %s860_s5 }
 0x211   : > { %p587_p1 = scmp.lt.u32.totalorder %s585_s26, %s581_s13  ;;  %p589_p6 = scmp.lt.u32.totalorder %s581_s13, %s811_s15 }
 0x212   : > { %p583_p8 = pnand %p582_p5, %p869_p11 }
 0x213   : > { %p588_p3 = por %p587_p1, %p586_p0 }
 0x214   : > { %p584_p9 = pneg %p583_p8 }
 0x215   : > { %p590_p12 = por %p589_p6, %p588_p3 }
 0x217   : > { %p591_p13 = pnand %p590_p12, %p584_p9 }
 0x219   : > { %594 = shalt.err (!%p591_p13)
}
 0x21a   : > { %482 = dma.vmem_to_hbm [thread:$0]  (%p869_p11), %s813_s10, 256, %s811_s15, %s378_s22  }
 0x21b PF: > { %s404_s7 = sand.u32 1, %s621_s18   ;;  %p870_p7 = scmp.ne.s32.totalorder %s865_s6, 0 }
 0x21c   : > { %p871_p10 = scmp.ge.s32.totalorder %s633_s21, 2  ;;  %s405_s9 = scalar_lea.sflag [#allocation4], %s404_s7 }
 0x21e   : > { %p489_p2 = pnand %p871_p10, %p870_p7 }
 0x220   : > { %616 = dma.done.wait (!%p489_p2), %s405_s9, 256  }
 0x221   : > { %618 = vsyncadd (!%p489_p2), %s405_s9, 4294967040  ;;  %p18_p4 = scmp.ge.s32.totalorder %s695_s24, 4   ;;  %s872_s18 = smov %s625_s19 }
 0x222   : > { %s873_s19 = smov %s629_s20  ;;  %s874_s20 = smov %s707_s27 }
 0x223   : > { %s875_s21 = smov %s695_s24  ;;  %20 = sbr.rel (!%p18_p4) target bundleno = 5 (0x5), region = 85 }
 0x22a   :  { %410 = vsyncpa [#allocation3], 1 }
 0x22b   :  { %412 = vsyncpa [#allocation3 + $0x1], 1 }
 0x22c   :  { %413 = vsyncpa [#allocation4], 1 }
 0x22d   :  { %415 = vsyncpa [#allocation4 + $0x1], 1 }

</bundles_post_ra>
